<compile_context>
chip_gen: v5e
topology: v5e:2x2
jax: 0.10.0
libtpu: 0.0.40
codegen_flags: <defaults>
</compile_context>

<pallas_src>
import functools

import jax
import jax.numpy as jnp
from jax.experimental import pallas as pl
from jax.experimental.pallas import tpu as pltpu

VMEM = pltpu.MemorySpace.VMEM


def _vmem_specs(n):
    return [pl.BlockSpec(memory_space=VMEM) for _ in range(n)]


# ----------------------------- fused forward kernel -----------------------------
def _dgcnn_kernel(a_ref, x_ref, gamma_ref, beta_ref, e_ref, et_ref, eyepat_ref,
                  wbig_ref, w1_ref, b1_ref, w3_ref, b3_ref, w4_ref, b4_ref,
                  out_ref, l_ref, *, mm_dtype):
    B, NF = x_ref.shape                 # x is pre-flattened to (B, N*F), lanes = (n, f)
    N = a_ref.shape[0]
    n_prop = wbig_ref.shape[0]          # K - 1 (the k = 0 Chebyshev term is identically 0)

    def mm(a, b):                       # MXU matmul; optionally bf16-fed, f32-accumulated
        return jnp.dot(a.astype(mm_dtype), b.astype(mm_dtype),
                       preferred_element_type=jnp.float32)

    # ---------------- normalize_A ----------------
    a = jnp.maximum(a_ref[...], 0.0)                        # relu(A)
    s = a + jnp.transpose(a)                                # A + A.T  (2-D XLU transpose)
    d_row = jnp.sum(s, axis=1, keepdims=True)               # (N, 1)
    d_col = jnp.sum(s, axis=0, keepdims=True)               # (1, N)  (s symmetric)
    L = (jax.lax.rsqrt(d_row + 1e-10) * s) * jax.lax.rsqrt(d_col + 1e-10)
    l_ref[...] = L

    # ------- BatchNorm1d over the feature channel (training-mode batch stats) -------
    # TODO(synk): running-stat buffer updates of BatchNorm1d are not modeled
    # (they do not affect the training-mode forward output).
    # Per-feature stats in the flattened layout: reduce over rows (batch) with a
    # plain sum, then reduce over the n-groups of the lane axis (and broadcast
    # back) with one matmul against EYEPAT[(n,f),(n',f')] = delta(f, f').
    eyepat = eyepat_ref[...]                                # (N*F, N*F) constant mask
    x = x_ref[...]                                          # (B, N*F), f32
    inv_bn = 1.0 / (B * N)
    mean = jnp.dot(jnp.sum(x, axis=0, keepdims=True), eyepat,
                   preferred_element_type=jnp.float32) * inv_bn          # (1, N*F)
    xc = x - mean
    var = jnp.dot(jnp.sum(xc * xc, axis=0, keepdims=True), eyepat,
                  preferred_element_type=jnp.float32) * inv_bn           # (1, N*F)
    xn = xc * jax.lax.rsqrt(var + 1e-5) * gamma_ref[...] + beta_ref[...]  # (B, N*F)

    # ------- build the flattened propagation operator M = kron(L^T, I_F) -------
    # expanded[(m,f'),(n,f)] = L[n,m] for all f',f, then masked to delta(f',f).
    lt = jnp.transpose(L)                                                 # (N, N)
    expanded = jnp.dot(et_ref[...],
                       jnp.dot(lt, e_ref[...], preferred_element_type=jnp.float32),
                       preferred_element_type=jnp.float32)                # (N*F, N*F)
    m = expanded * eyepat

    # ------- Chebyshev propagation + per-order weight accumulation -------
    # P_1 = X @ M  (== L @ X in node space); P_k = 2*P_{k-1} @ M - P_{k-1}
    # g  += P_k @ kron(I_N, gc_w[k])  -> lands directly in (B, N*O) flat layout.
    p = mm(xn, m)                                                         # (B, N*F)
    g = mm(p, wbig_ref[0])                                                # (B, N*O)
    for k in range(1, n_prop):
        p = 2.0 * mm(p, m) - p
        g = g + mm(p, wbig_ref[k])
    g = jnp.maximum(g, 0.0)                                               # relu

    # ---------------- MLP head: fc1 -> elu -> fc3 -> elu -> fc4 ----------------
    def elu(v):
        # NOTE: review suggested jnp.expm1; the TPU EUP has no expm1 instruction
        # (it would decompose to exp - 1 anyway), so exp(v) - 1 is kept — values
        # feeding elu here are far from the cancellation regime.
        return jnp.where(v > 0, v, jnp.exp(v) - 1.0)

    h1 = elu(mm(g, w1_ref[...]) + b1_ref[...])
    h2 = elu(mm(h1, w3_ref[...]) + b3_ref[...])
    out_ref[...] = mm(h2, w4_ref[...]) + b4_ref[...]


def dgcnn1_forward(x, A, p, *, mm_dtype=jnp.float32):
    """x: (B, N, F); A: (N, N); p: parameter dict. Returns (logits, L)."""
    B, N, F = x.shape
    K, _, O = p["gc_w"].shape
    nclass = p["w4t"].shape[-1]
    assert K >= 2, "K < 2 makes the Chebynet output identically zero (T0 == 0)"
    f32 = jnp.float32

    # ---- wrapper-side layout plumbing (pure XLA, tiny constants) ----
    x_flat = x.reshape(B, N * F).astype(f32)                 # lanes ordered (n, f)
    gamma_t = jnp.tile(p["bn_gamma"].astype(f32), N).reshape(1, N * F)
    beta_t = jnp.tile(p["bn_beta"].astype(f32), N).reshape(1, N * F)

    eye_n = jnp.eye(N, dtype=f32)
    E = jnp.kron(eye_n, jnp.ones((1, F), f32))               # (N, N*F)   node expander
    ET = E.T                                                 # (N*F, N)
    EYEPAT = jnp.kron(jnp.ones((N, N), f32), jnp.eye(F, dtype=f32))   # (N*F, N*F)

    # T0 == 0 in generate_cheby_adj => gc_w[0] never contributes; drop it.
    # kron(I_N, gc_w[k]) makes the (n,f)->(n,o) contraction a single 2-D matmul
    # whose output is already the flattened (B, N*O) slab fc1 consumes.
    wbig = jnp.stack([jnp.kron(eye_n, p["gc_w"][k].astype(f32)) for k in range(1, K)])

    kernel = functools.partial(_dgcnn_kernel, mm_dtype=mm_dtype)
    out, L = pl.pallas_call(
        kernel,
        out_shape=(jax.ShapeDtypeStruct((B, nclass), jnp.float32),
                   jax.ShapeDtypeStruct((N, N), jnp.float32)),
        in_specs=_vmem_specs(14),
        out_specs=(pl.BlockSpec(memory_space=VMEM),
                   pl.BlockSpec(memory_space=VMEM)),
        # TODO(synk): if B grows beyond toy size, add a batch grid axis over B
        # (BlockSpec-tile x_flat / out, weights index_map -> 0) marked "parallel"
        # so v7x's two TensorCores share work; size the B-block against v7x's
        # 64 MiB VMEM (not v5e/v6e's 128 MiB).
    )(A.astype(f32), x_flat, gamma_t, beta_t, E, ET, EYEPAT, wbig,
      p["w1t"], p["b1"].reshape(1, -1),
      p["w3t"], p["b3"].reshape(1, -1),
      p["w4t"], p["b4"].reshape(1, -1))
    return out, L


# ------------------------- pure-JAX reference check -------------------------
def reference_forward(x, A, p):
    A_ = jax.nn.relu(A)
    A_ = A_ + A_.T
    d = 1.0 / jnp.sqrt(jnp.sum(A_, axis=1) + 1e-10)
    L = (jnp.diag(d) @ A_) @ jnp.diag(d)

    mean = jnp.mean(x, axis=(0, 1))
    var = jnp.mean((x - mean) ** 2, axis=(0, 1))
    xn = (x - mean) / jnp.sqrt(var + 1e-5) * p["bn_gamma"] + p["bn_beta"]

    K = p["gc_w"].shape[0]
    N = A.shape[0]
    sup = [jnp.zeros((N, N), jnp.float32), L]
    for k in range(2, K):
        sup.append((2.0 * L) @ sup[k - 1] - sup[k - 1])
    res = jnp.zeros((x.shape[0], N, p["gc_w"].shape[-1]), jnp.float32)
    for k in range(K):
        res = res + jnp.einsum("ij,bjf,fo->bio", sup[k], xn, p["gc_w"][k])
    res = jax.nn.relu(res)
    h = res.reshape(x.shape[0], -1)

    def elu(v):
        return jnp.where(v > 0, v, jnp.exp(v) - 1.0)

    h = elu(h @ p["w1t"] + p["b1"])
    h = elu(h @ p["w3t"] + p["b3"])
    return h @ p["w4t"] + p["b4"], L


if __name__ == "__main__":
    # Small shapes implied by the module: xdim = (B, N, F)
    B, N, F = 2, 16, 8          # batch, graph nodes, features per node
    K, NUM_OUT, NCLASS = 3, 16, 7

    key = jax.random.PRNGKey(0)
    ks = jax.random.split(key, 10)

    x = jax.random.normal(ks[0], (B, N, F), dtype=jnp.float32)
    A = jax.random.uniform(ks[1], (N, N), dtype=jnp.float32)   # s_adjmatrix

    params = {
        # BatchNorm1d(F) default init
        "bn_gamma": jnp.ones((F,), jnp.float32),
        "bn_beta": jnp.zeros((F,), jnp.float32),
        # K GraphConvolution weights (F -> NUM_OUT)
        "gc_w": 0.1 * jax.random.normal(ks[2], (K, F, NUM_OUT), dtype=jnp.float32),
        # Linear layers, stored pre-transposed as (in, out)
        "w1t": 0.1 * jax.random.normal(ks[3], (N * NUM_OUT, 32), dtype=jnp.float32),
        "b1": 0.1 * jax.random.normal(ks[4], (32,), dtype=jnp.float32),
        "w3t": 0.1 * jax.random.normal(ks[5], (32, 8), dtype=jnp.float32),
        "b3": 0.1 * jax.random.normal(ks[6], (8,), dtype=jnp.float32),
        "w4t": 0.1 * jax.random.normal(ks[7], (8, NCLASS), dtype=jnp.float32),
        "b4": 0.1 * jax.random.normal(ks[8], (NCLASS,), dtype=jnp.float32),
    }

    # f32 path (exact reference match)
    out, L = jax.jit(dgcnn1_forward)(x, A, params)
    out = jax.block_until_ready(out)
    L = jax.block_until_ready(L)

    ref_out, ref_L = reference_forward(x, A, params)
    assert out.shape == (B, NCLASS) and L.shape == (N, N)
    assert jnp.allclose(out, ref_out, rtol=1e-4, atol=1e-4)
    assert jnp.allclose(L, ref_L, rtol=1e-4, atol=1e-4)

    # bf16-fed MXU path (v6e/v7x advice): just exercise compile + run + sanity.
    out_bf, L_bf = jax.jit(functools.partial(dgcnn1_forward, mm_dtype=jnp.bfloat16))(
        x, A, params)
    out_bf = jax.block_until_ready(out_bf)
    L_bf = jax.block_until_ready(L_bf)
    assert bool(jnp.all(jnp.isfinite(out_bf))) and out_bf.shape == (B, NCLASS)

    print("KERNEL_OK")
</pallas_src>

<mosaic_0001>
module attributes {stable_mosaic.version = 11 : i64} {
  func.func @_dgcnn_kernel(%arg0: memref<16x16xf32, #tpu.memory_space<vmem>>, %arg1: memref<2x128xf32, #tpu.memory_space<vmem>>, %arg2: memref<1x128xf32, #tpu.memory_space<vmem>>, %arg3: memref<1x128xf32, #tpu.memory_space<vmem>>, %arg4: memref<16x128xf32, #tpu.memory_space<vmem>>, %arg5: memref<128x16xf32, #tpu.memory_space<vmem>>, %arg6: memref<128x128xf32, #tpu.memory_space<vmem>>, %arg7: memref<2x128x256xf32, #tpu.memory_space<vmem>>, %arg8: memref<256x32xf32, #tpu.memory_space<vmem>>, %arg9: memref<1x32xf32, #tpu.memory_space<vmem>>, %arg10: memref<32x8xf32, #tpu.memory_space<vmem>>, %arg11: memref<1x8xf32, #tpu.memory_space<vmem>>, %arg12: memref<8x7xf32, #tpu.memory_space<vmem>>, %arg13: memref<1x7xf32, #tpu.memory_space<vmem>>, %arg14: memref<2x7xf32, #tpu.memory_space<vmem>>, %arg15: memref<16x16xf32, #tpu.memory_space<vmem>>) attributes {dimension_semantics = [], scalar_prefetch = 0 : i64, scratch_operands = 0 : i64, tpu.core_type = #tpu.core_type<tc>} {
    %c0 = arith.constant 0 : index
    %c0_0 = arith.constant 0 : index
    %0 = vector.load %arg0[%c0, %c0_0] : memref<16x16xf32, #tpu.memory_space<vmem>>, vector<16x16xf32>
    %cst = arith.constant 0.000000e+00 : f32
    %1 = vector.broadcast %cst : f32 to vector<16x16xf32>
    %2 = arith.maximumf %0, %1 : vector<16x16xf32>
    %3 = tpu.transpose %2, [1, 0] : vector<16x16xf32> -> vector<16x16xf32>
    %4 = arith.addf %2, %3 : vector<16x16xf32>
    %cst_1 = arith.constant dense<0.000000e+00> : vector<16xf32>
    %5 = vector.multi_reduction <add>, %4, %cst_1 [1] : vector<16x16xf32> to vector<16xf32>
    %6 = vector.shape_cast %5 : vector<16xf32> to vector<16x1xf32>
    %cst_2 = arith.constant dense<0.000000e+00> : vector<16xf32>
    %7 = vector.multi_reduction <add>, %4, %cst_2 [0] : vector<16x16xf32> to vector<16xf32>
    %8 = vector.shape_cast %7 : vector<16xf32> to vector<1x16xf32>
    %cst_3 = arith.constant 1.000000e-10 : f32
    %9 = vector.broadcast %cst_3 : f32 to vector<16x1xf32>
    %10 = arith.addf %6, %9 : vector<16x1xf32>
    %11 = math.rsqrt %10 : vector<16x1xf32>
    %12 = vector.broadcast %11 : vector<16x1xf32> to vector<16x16xf32>
    %13 = arith.mulf %12, %4 : vector<16x16xf32>
    %cst_4 = arith.constant 1.000000e-10 : f32
    %14 = vector.broadcast %cst_4 : f32 to vector<1x16xf32>
    %15 = arith.addf %8, %14 : vector<1x16xf32>
    %16 = math.rsqrt %15 : vector<1x16xf32>
    %17 = vector.broadcast %16 : vector<1x16xf32> to vector<16x16xf32>
    %18 = arith.mulf %13, %17 : vector<16x16xf32>
    %c0_5 = arith.constant 0 : index
    %c0_6 = arith.constant 0 : index
    %19 = vector.load %arg15[%c0_5, %c0_6] : memref<16x16xf32, #tpu.memory_space<vmem>>, vector<16x16xf32>
    tpu.vector_store %arg15[%c0_5, %c0_6], %18 {strides = array<i32>} : memref<16x16xf32, #tpu.memory_space<vmem>>, vector<16x16xf32>,
    %c0_7 = arith.constant 0 : index
    %c0_8 = arith.constant 0 : index
    %20 = vector.load %arg6[%c0_7, %c0_8] : memref<128x128xf32, #tpu.memory_space<vmem>>, vector<128x128xf32>
    %c0_9 = arith.constant 0 : index
    %c0_10 = arith.constant 0 : index
    %21 = vector.load %arg1[%c0_9, %c0_10] : memref<2x128xf32, #tpu.memory_space<vmem>>, vector<2x128xf32>
    %cst_11 = arith.constant dense<0.000000e+00> : vector<128xf32>
    %22 = vector.multi_reduction <add>, %21, %cst_11 [0] : vector<2x128xf32> to vector<128xf32>
    %23 = vector.shape_cast %22 : vector<128xf32> to vector<1x128xf32>
    %cst_12 = arith.constant dense<0.000000e+00> : vector<1x128xf32>
    %24 = tpu.matmul %23, %20, %cst_12 {dimension_numbers = #tpu.dot_dimension_numbers<[1], [0], [0], [1], [0, 0, 1, 1], [], []>} : vector<1x128xf32>, vector<128x128xf32>, vector<1x128xf32> -> vector<1x128xf32>
    %cst_13 = arith.constant 3.125000e-02 : f32
    %25 = vector.broadcast %cst_13 : f32 to vector<1x128xf32>
    %26 = arith.mulf %24, %25 : vector<1x128xf32>
    %27 = vector.broadcast %26 : vector<1x128xf32> to vector<2x128xf32>
    %28 = arith.subf %21, %27 : vector<2x128xf32>
    %29 = arith.mulf %28, %28 : vector<2x128xf32>
    %cst_14 = arith.constant dense<0.000000e+00> : vector<128xf32>
    %30 = vector.multi_reduction <add>, %29, %cst_14 [0] : vector<2x128xf32> to vector<128xf32>
    %31 = vector.shape_cast %30 : vector<128xf32> to vector<1x128xf32>
    %cst_15 = arith.constant dense<0.000000e+00> : vector<1x128xf32>
    %32 = tpu.matmul %31, %20, %cst_15 {dimension_numbers = #tpu.dot_dimension_numbers<[1], [0], [0], [1], [0, 0, 1, 1], [], []>} : vector<1x128xf32>, vector<128x128xf32>, vector<1x128xf32> -> vector<1x128xf32>
    %cst_16 = arith.constant 3.125000e-02 : f32
    %33 = vector.broadcast %cst_16 : f32 to vector<1x128xf32>
    %34 = arith.mulf %32, %33 : vector<1x128xf32>
    %cst_17 = arith.constant 9.99999974E-6 : f32
    %35 = vector.broadcast %cst_17 : f32 to vector<1x128xf32>
    %36 = arith.addf %34, %35 : vector<1x128xf32>
    %37 = math.rsqrt %36 : vector<1x128xf32>
    %38 = vector.broadcast %37 : vector<1x128xf32> to vector<2x128xf32>
    %39 = arith.mulf %28, %38 : vector<2x128xf32>
    %c0_18 = arith.constant 0 : index
    %c0_19 = arith.constant 0 : index
    %40 = vector.load %arg2[%c0_18, %c0_19] : memref<1x128xf32, #tpu.memory_space<vmem>>, vector<1x128xf32>
    %41 = vector.broadcast %40 : vector<1x128xf32> to vector<2x128xf32>
    %42 = arith.mulf %39, %41 : vector<2x128xf32>
    %c0_20 = arith.constant 0 : index
    %c0_21 = arith.constant 0 : index
    %43 = vector.load %arg3[%c0_20, %c0_21] : memref<1x128xf32, #tpu.memory_space<vmem>>, vector<1x128xf32>
    %44 = vector.broadcast %43 : vector<1x128xf32> to vector<2x128xf32>
    %45 = arith.addf %42, %44 : vector<2x128xf32>
    %46 = tpu.transpose %18, [1, 0] : vector<16x16xf32> -> vector<16x16xf32>
    %c0_22 = arith.constant 0 : index
    %c0_23 = arith.constant 0 : index
    %47 = vector.load %arg5[%c0_22, %c0_23] : memref<128x16xf32, #tpu.memory_space<vmem>>, vector<128x16xf32>
    %c0_24 = arith.constant 0 : index
    %c0_25 = arith.constant 0 : index
    %48 = vector.load %arg4[%c0_24, %c0_25] : memref<16x128xf32, #tpu.memory_space<vmem>>, vector<16x128xf32>
    %cst_26 = arith.constant dense<0.000000e+00> : vector<16x128xf32>
    %49 = tpu.matmul %46, %48, %cst_26 {dimension_numbers = #tpu.dot_dimension_numbers<[1], [0], [0], [1], [0, 0, 1, 1], [], []>} : vector<16x16xf32>, vector<16x128xf32>, vector<16x128xf32> -> vector<16x128xf32>
    %cst_27 = arith.constant dense<0.000000e+00> : vector<128x128xf32>
    %50 = tpu.matmul %47, %49, %cst_27 {dimension_numbers = #tpu.dot_dimension_numbers<[1], [0], [0], [1], [0, 0, 1, 1], [], []>} : vector<128x16xf32>, vector<16x128xf32>, vector<128x128xf32> -> vector<128x128xf32>
    %51 = arith.mulf %50, %20 : vector<128x128xf32>
    %cst_28 = arith.constant dense<0.000000e+00> : vector<2x128xf32>
    %52 = tpu.matmul %45, %51, %cst_28 {dimension_numbers = #tpu.dot_dimension_numbers<[1], [0], [0], [1], [0, 0, 1, 1], [], []>} : vector<2x128xf32>, vector<128x128xf32>, vector<2x128xf32> -> vector<2x128xf32>
    %c0_29 = arith.constant 0 : index
    %c0_30 = arith.constant 0 : index
    %c0_31 = arith.constant 0 : index
    %53 = vector.load %arg7[%c0_29, %c0_30, %c0_31] : memref<2x128x256xf32, #tpu.memory_space<vmem>>, vector<1x128x256xf32>
    %54 = vector.shape_cast %53 : vector<1x128x256xf32> to vector<128x256xf32>
    %cst_32 = arith.constant dense<0.000000e+00> : vector<2x256xf32>
    %55 = tpu.matmul %52, %54, %cst_32 {dimension_numbers = #tpu.dot_dimension_numbers<[1], [0], [0], [1], [0, 0, 1, 1], [], []>} : vector<2x128xf32>, vector<128x256xf32>, vector<2x256xf32> -> vector<2x256xf32>
    %cst_33 = arith.constant dense<0.000000e+00> : vector<2x128xf32>
    %56 = tpu.matmul %52, %51, %cst_33 {dimension_numbers = #tpu.dot_dimension_numbers<[1], [0], [0], [1], [0, 0, 1, 1], [], []>} : vector<2x128xf32>, vector<128x128xf32>, vector<2x128xf32> -> vector<2x128xf32>
    %cst_34 = arith.constant 2.000000e+00 : f32
    %57 = vector.broadcast %cst_34 : f32 to vector<2x128xf32>
    %58 = arith.mulf %57, %56 : vector<2x128xf32>
    %59 = arith.subf %58, %52 : vector<2x128xf32>
    %c1 = arith.constant 1 : index
    %c0_35 = arith.constant 0 : index
    %c0_36 = arith.constant 0 : index
    %60 = vector.load %arg7[%c1, %c0_35, %c0_36] : memref<2x128x256xf32, #tpu.memory_space<vmem>>, vector<1x128x256xf32>
    %61 = vector.shape_cast %60 : vector<1x128x256xf32> to vector<128x256xf32>
    %cst_37 = arith.constant dense<0.000000e+00> : vector<2x256xf32>
    %62 = tpu.matmul %59, %61, %cst_37 {dimension_numbers = #tpu.dot_dimension_numbers<[1], [0], [0], [1], [0, 0, 1, 1], [], []>} : vector<2x128xf32>, vector<128x256xf32>, vector<2x256xf32> -> vector<2x256xf32>
    %63 = arith.addf %55, %62 : vector<2x256xf32>
    %cst_38 = arith.constant 0.000000e+00 : f32
    %64 = vector.broadcast %cst_38 : f32 to vector<2x256xf32>
    %65 = arith.maximumf %63, %64 : vector<2x256xf32>
    %c0_39 = arith.constant 0 : index
    %c0_40 = arith.constant 0 : index
    %66 = vector.load %arg8[%c0_39, %c0_40] : memref<256x32xf32, #tpu.memory_space<vmem>>, vector<256x32xf32>
    %cst_41 = arith.constant dense<0.000000e+00> : vector<2x32xf32>
    %67 = tpu.matmul %65, %66, %cst_41 {dimension_numbers = #tpu.dot_dimension_numbers<[1], [0], [0], [1], [0, 0, 1, 1], [], []>} : vector<2x256xf32>, vector<256x32xf32>, vector<2x32xf32> -> vector<2x32xf32>
    %c0_42 = arith.constant 0 : index
    %c0_43 = arith.constant 0 : index
    %68 = vector.load %arg9[%c0_42, %c0_43] : memref<1x32xf32, #tpu.memory_space<vmem>>, vector<1x32xf32>
    %69 = vector.broadcast %68 : vector<1x32xf32> to vector<2x32xf32>
    %70 = arith.addf %67, %69 : vector<2x32xf32>
    %cst_44 = arith.constant 0.000000e+00 : f32
    %71 = vector.broadcast %cst_44 : f32 to vector<2x32xf32>
    %72 = arith.cmpf ogt, %70, %71 : vector<2x32xf32>
    %73 = math.exp %70 : vector<2x32xf32>
    %cst_45 = arith.constant 1.000000e+00 : f32
    %74 = vector.broadcast %cst_45 : f32 to vector<2x32xf32>
    %75 = arith.subf %73, %74 : vector<2x32xf32>
    %76 = arith.select %72, %70, %75 : vector<2x32xi1>, vector<2x32xf32>
    %c0_46 = arith.constant 0 : index
    %c0_47 = arith.constant 0 : index
    %77 = vector.load %arg10[%c0_46, %c0_47] : memref<32x8xf32, #tpu.memory_space<vmem>>, vector<32x8xf32>
    %cst_48 = arith.constant dense<0.000000e+00> : vector<2x8xf32>
    %78 = tpu.matmul %76, %77, %cst_48 {dimension_numbers = #tpu.dot_dimension_numbers<[1], [0], [0], [1], [0, 0, 1, 1], [], []>} : vector<2x32xf32>, vector<32x8xf32>, vector<2x8xf32> -> vector<2x8xf32>
    %c0_49 = arith.constant 0 : index
    %c0_50 = arith.constant 0 : index
    %79 = vector.load %arg11[%c0_49, %c0_50] : memref<1x8xf32, #tpu.memory_space<vmem>>, vector<1x8xf32>
    %80 = vector.broadcast %79 : vector<1x8xf32> to vector<2x8xf32>
    %81 = arith.addf %78, %80 : vector<2x8xf32>
    %cst_51 = arith.constant 0.000000e+00 : f32
    %82 = vector.broadcast %cst_51 : f32 to vector<2x8xf32>
    %83 = arith.cmpf ogt, %81, %82 : vector<2x8xf32>
    %84 = math.exp %81 : vector<2x8xf32>
    %cst_52 = arith.constant 1.000000e+00 : f32
    %85 = vector.broadcast %cst_52 : f32 to vector<2x8xf32>
    %86 = arith.subf %84, %85 : vector<2x8xf32>
    %87 = arith.select %83, %81, %86 : vector<2x8xi1>, vector<2x8xf32>
    %c0_53 = arith.constant 0 : index
    %c0_54 = arith.constant 0 : index
    %88 = vector.load %arg12[%c0_53, %c0_54] : memref<8x7xf32, #tpu.memory_space<vmem>>, vector<8x7xf32>
    %cst_55 = arith.constant dense<0.000000e+00> : vector<2x7xf32>
    %89 = tpu.matmul %87, %88, %cst_55 {dimension_numbers = #tpu.dot_dimension_numbers<[1], [0], [0], [1], [0, 0, 1, 1], [], []>} : vector<2x8xf32>, vector<8x7xf32>, vector<2x7xf32> -> vector<2x7xf32>
    %c0_56 = arith.constant 0 : index
    %c0_57 = arith.constant 0 : index
    %90 = vector.load %arg13[%c0_56, %c0_57] : memref<1x7xf32, #tpu.memory_space<vmem>>, vector<1x7xf32>
    %91 = vector.broadcast %90 : vector<1x7xf32> to vector<2x7xf32>
    %92 = arith.addf %89, %91 : vector<2x7xf32>
    %c0_58 = arith.constant 0 : index
    %c0_59 = arith.constant 0 : index
    %93 = vector.load %arg14[%c0_58, %c0_59] : memref<2x7xf32, #tpu.memory_space<vmem>>, vector<2x7xf32>
    tpu.vector_store %arg14[%c0_58, %c0_59], %92 {strides = array<i32>} : memref<2x7xf32, #tpu.memory_space<vmem>>, vector<2x7xf32>,
    return
  }
}

</mosaic_0001>

<bundles_post_ra>
// kernel: tile.13
= control target key start
LH: loop header
LB: loop body
LE: loop exit
PB: predicated region body
PF: predicated region fallthrough
CT: control target
= control target key end

     0   :  { %s28_s0 = inlined_call_operand.vmem [shape: f32[8], index: 0, kind: input, shape index: {}]   ;;  %s29_s1 = inlined_call_operand.vmem [shape: f32[16,8], index: 1, kind: output, shape index: {}]  }
   0x1   :  { %v4_v0 = vld [vmem:[%s28_s0] ss:$0 sm:$0xff] }
   0x2   :  { %5 = vst [vmem:[%s29_s1] sm:$0xff] %v4_v0 }
   0x3   :  { %8 = vst [vmem:[%s29_s1 + $0x8] sm:$0xff] %v4_v0 }

// kernel: tile.14
= control target key start
LH: loop header
LB: loop body
LE: loop exit
PB: predicated region body
PF: predicated region fallthrough
CT: control target
= control target key end

     0   :  { %s131_s10 = smov 120   ;;  %s132_s11 = smov 104   ;;  %vm3_vm0 = vcmask 64512   ;;  %vm9_vm1 = vcmask 1048512   ;;  %vm15_vm2 = vcmask 982912   ;;  %vm21_vm3 = vcmask 917312   ;;  %s207_s0 = inlined_call_operand.vmem [shape: f32[16,8], index: 0, kind: input, shape index: {}]   ;;  %s208_s1 = inlined_call_operand.vmem [shape: f32[1,128], index: 1, kind: output, shape index: {}]  }
   0x1   :  { %v101_v0 = vld [vmem:[%s207_s0 + $0xf] sm:$0x1]   ;;  %v103_v1 = vld [vmem:[%s207_s0 + $0xd] sm:$0x1]   ;;  %v105_v2 = vld [vmem:[%s207_s0 + $0xb] sm:$0x1]  }
   0x2   :  { %7 = vrot.lane.b32.xlu0 %v101_v0, %s131_s10  ;;  %19 = vrot.lane.b32.xlu1 %v103_v1, %s132_s11  ;;  %s133_s14 = smov 88   ;;  %v102_v3 = vld [vmem:[%s207_s0 + $0xe] sm:$0x1]   ;;  %v104_v4 = vld [vmem:[%s207_s0 + $0xc] sm:$0x1]   ;;  %s134_s19 = smov 112  }
   0x3   :  { %31 = vrot.lane.b32.xlu2 %v105_v2, %s133_s14  ;;  %s135_s20 = smov 96   ;;  %v106_v5 = vld [vmem:[%s207_s0 + $0xa] sm:$0x1]   ;;  %s136_s23 = smov 80   ;;  %v107_v6 = vld [vmem:[%s207_s0 + $0x9] sm:$0x1]  }
   0x4   :  { %v108_v7 = vld [vmem:[%s207_s0 + $0x8] sm:$0x1]   ;;  %s137_s28 = smov 72   ;;  %s138_s29 = smov 64   ;;  %v109_v8 = vld [vmem:[%s207_s0 + $0x7] sm:$0x1]  }
   0x5   :  { %s139_s3 = smov 56   ;;  %v110_v9 = vld [vmem:[%s207_s0 + $0x6] sm:$0x1]   ;;  %v111_v10 = vld [vmem:[%s207_s0 + $0x5] sm:$0x1]   ;;  %s140_s8 = smov 48  }
   0x6   :  { %s141_s9 = smov 40   ;;  %v112_v11 = vld [vmem:[%s207_s0 + $0x4] sm:$0x1]   ;;  %s142_s12 = smov 32   ;;  %v113_v12 = vld [vmem:[%s207_s0 + $0x3] sm:$0x1]  }
   0x7   :  { %v114_v13 = vld [vmem:[%s207_s0 + $0x2] sm:$0x1]   ;;  %s143_s17 = smov 24   ;;  %s144_s18 = smov 16   ;;  %v115_v14 = vld [vmem:[%s207_s0 + $0x1] sm:$0x1]  }
   0x8   :  { %s145_s21 = smov 8   ;;  %v2_v15 = vld [vmem:[%s207_s0] sm:$0x1]   ;;  %vm27_vm4 = vcmask 851712   ;;  %vm33_vm5 = vcmask 786112   ;;  %vm39_vm6 = vcmask 720512  }
   0x9   :  { %4 = vst.msk [vmem:[#allocation0] sm:$0x1] %vm3_vm0, %v2_v15   ;;  %vm45_vm7 = vcmask 654912   ;;  %vm51_vm8 = vcmask 589312   ;;  %vm57_vm9 = vcmask 523712   ;;  %vm63_vm10 = vcmask 458112  }
   0xa   :  { %13 = vrot.lane.b32.xlu0 %v102_v3, %s134_s19  ;;  %25 = vrot.lane.b32.xlu1 %v104_v4, %s135_s20  ;;  %vm69_vm11 = vcmask 392512   ;;  %vm75_vm12 = vcmask 326912   ;;  %vm81_vm13 = vcmask 261312   ;;  %vm87_vm14 = vcmask 195712  }
   0xb   :  { %37 = vrot.lane.b32.xlu2 %v106_v5, %s136_s23  ;;  %vm93_vm15 = vcmask 130112  }
  0x12   :  { %43 = vrot.lane.b32.xlu0 %v107_v6, %s137_s28  ;;  %49 = vrot.lane.b32.xlu1 %v108_v7, %s138_s29 }
  0x13   :  { %55 = vrot.lane.b32.xlu2 %v109_v8, %s139_s3 }
  0x1a   :  { %61 = vrot.lane.b32.xlu0 %v110_v9, %s140_s8  ;;  %67 = vrot.lane.b32.xlu1 %v111_v10, %s141_s9 }
  0x1b   :  { %73 = vrot.lane.b32.xlu2 %v112_v11, %s142_s12 }
  0x22   :  { %79 = vrot.lane.b32.xlu0 %v113_v12, %s143_s17  ;;  %85 = vrot.lane.b32.xlu1 %v114_v13, %s144_s18 }
  0x23   :  { %91 = vrot.lane.b32.xlu2 %v115_v14, %s145_s21 }
  0x5d   :  { %v32_v16 = vpop.permute.xlu2 %31  }
  0x65   :  { %v38_v17 = vpop.permute.xlu2 %37  }
  0x6d   :  { %v56_v18 = vpop.permute.xlu2 %55  }
  0x74   :  { %v8_v19 = vpop.permute.xlu0 %7   ;;  %v20_v20 = vpop.permute.xlu1 %19  }
  0x75   :  { %10 = vst.msk [vmem:[#allocation0] sm:$0x1] %vm9_vm1, %v8_v19   ;;  %v74_v21 = vpop.permute.xlu2 %73  }
  0x7c   :  { %v14_v22 = vpop.permute.xlu0 %13   ;;  %v26_v23 = vpop.permute.xlu1 %25  }
  0x7d   :  { %16 = vst.msk [vmem:[#allocation0] sm:$0x1] %vm15_vm2, %v14_v22   ;;  %v92_v24 = vpop.permute.xlu2 %91  }
  0x7e   :  { %22 = vst.msk [vmem:[#allocation0] sm:$0x1] %vm21_vm3, %v20_v20  }
  0x7f   :  { %28 = vst.msk [vmem:[#allocation0] sm:$0x1] %vm27_vm4, %v26_v23  }
  0x80   :  { %34 = vst.msk [vmem:[#allocation0] sm:$0x1] %vm33_vm5, %v32_v16  }
  0x81   :  { %40 = vst.msk [vmem:[#allocation0] sm:$0x1] %vm39_vm6, %v38_v17  }
  0x84   :  { %v44_v25 = vpop.permute.xlu0 %43   ;;  %v50_v26 = vpop.permute.xlu1 %49  }
  0x85   :  { %46 = vst.msk [vmem:[#allocation0] sm:$0x1] %vm45_vm7, %v44_v25  }
  0x86   :  { %52 = vst.msk [vmem:[#allocation0] sm:$0x1] %vm51_vm8, %v50_v26  }
  0x87   :  { %58 = vst.msk [vmem:[#allocation0] sm:$0x1] %vm57_vm9, %v56_v18  }
  0x8c   :  { %v62_v27 = vpop.permute.xlu0 %61   ;;  %v68_v28 = vpop.permute.xlu1 %67  }
  0x8d   :  { %64 = vst.msk [vmem:[#allocation0] sm:$0x1] %vm63_vm10, %v62_v27  }
  0x8e   :  { %70 = vst.msk [vmem:[#allocation0] sm:$0x1] %vm69_vm11, %v68_v28  }
  0x8f   :  { %76 = vst.msk [vmem:[#allocation0] sm:$0x1] %vm75_vm12, %v74_v21  }
  0x94   :  { %v80_v29 = vpop.permute.xlu0 %79   ;;  %v86_v30 = vpop.permute.xlu1 %85  }
  0x95   :  { %82 = vst.msk [vmem:[#allocation0] sm:$0x1] %vm81_vm13, %v80_v29  }
  0x96   :  { %88 = vst.msk [vmem:[#allocation0] sm:$0x1] %vm87_vm14, %v86_v30  }
  0x97   :  { %94 = vst.msk [vmem:[#allocation0] sm:$0x1] %vm93_vm15, %v92_v24  }
  0x9e   :  { %v97_v31 = vld [vmem:[#allocation0] sm:$0x1] }
  0x9f   :  { %100 = vst [vmem:[%s208_s1] sm:$0x1] %v97_v31 }

// kernel: dgcnn1_forward.1
= control target key start
LH: loop header
LB: loop body
LE: loop exit
PB: predicated region body
PF: predicated region fallthrough
CT: control target
= control target key end

     0   :  { %21 = vsyncpa [#allocation3], 0  ;;  %s1627_s0 = inlined_call_operand.vmem [shape: f32[16,16], index: 0, kind: input, shape index: {}]   ;;  %s1628_s1 = inlined_call_operand.vmem [shape: f32[2,128], index: 1, kind: input, shape index: {}]   ;;  %s1629_s2 = inlined_call_operand.vmem [shape: f32[1,128], index: 2, kind: input, shape index: {}]   ;;  %s1630_s3 = inlined_call_operand.vmem [shape: f32[1,128], index: 3, kind: input, shape index: {}]   ;;  %s1631_s4 = inlined_call_operand.vmem [shape: f32[16,128], index: 4, kind: input, shape index: {}]   ;;  %s1632_s5 = inlined_call_operand.vmem [shape: f32[128,16], index: 5, kind: input, shape index: {}]   ;;  %s1633_s6 = inlined_call_operand.vmem [shape: f32[128,128], index: 6, kind: input, shape index: {}]   ;;  %s1634_s7 = inlined_call_operand.vmem [shape: f32[2,128,256], index: 7, kind: input, shape index: {}]   ;;  %s1635_s8 = inlined_call_operand.vmem [shape: f32[256,32], index: 8, kind: input, shape index: {}]   ;;  %s1636_s9 = inlined_call_operand.vmem [shape: f32[1,32], index: 9, kind: input, shape index: {}]   ;;  %s1637_s10 = inlined_call_operand.vmem [shape: f32[32,8], index: 10, kind: input, shape index: {}]   ;;  %s1638_s11 = inlined_call_operand.vmem [shape: f32[1,8], index: 11, kind: input, shape index: {}]   ;;  %s1639_s12 = inlined_call_operand.vmem [shape: f32[8,7], index: 12, kind: input, shape index: {}]   ;;  %s1640_s13 = inlined_call_operand.vmem [shape: f32[1,7], index: 13, kind: input, shape index: {}]   ;;  %s1641_s14 = inlined_call_operand.hbm [shape: f32[2,7], index: 14, kind: output, shape index: {0}]   ;;  %s1642_s15 = inlined_call_operand.hbm [shape: f32[16,16], index: 15, kind: output, shape index: {1}]  }
   0x1   :  { %v51_v0 = vld [vmem:[%s1627_s0] sm:$0xff] }
   0x2   :  { %v53_v1 = vmax.f32 %v51_v0, 0.0 }
   0x3   :  { %22 = vsyncpa [#allocation5], 0  ;;  %v52_v2 = vld [vmem:[%s1627_s0 + $0x8] sm:$0xff]  ;;  %vm89_vm0 = vcmask 130048   ;;  %v1056_v21 = vld [vmem:[%s1633_s6 + $0x78] sm:$0xff]  ;;  %vm159_vm1 = vcmask 1041408  }
   0x4   :  { %55 = vxpose.xlu0.b32.start [1/2] (short) (narrow) %v53_v1, 16  ;;  %v54_v3 = vmax.f32 %v52_v2, 0.0  ;;  %v1061_v22 = vld [vmem:[%s1633_s6 + $0x70] sm:$0xff]  ;;  %167 = vmatpush.msra.mxu0 %v1056_v21  ;;  %v1070_v24 = vld [vmem:[%s1633_s6 + $0x68] sm:$0xff]  ;;  %v1077_v25 = vld [vmem:[%s1633_s6 + $0x60] sm:$0xff]  ;;  %vm728_vm14 = vcmask 261120  }
   0x5   :  { %198 = vmatpush.msra.mxu1 %v1056_v21  ;;  %v1084_v27 = vld [vmem:[%s1628_s1] sm:$0x3]  ;;  %v291_v28 = vld [vmem:[%s1631_s4 + $0x8] sm:$0xff]  ;;  %v1093_v29 = vld [vmem:[%s1633_s6 + $0x58] sm:$0xff]  ;;  %s953_s25 = smov [#allocation2]   ;;  %s795_s29 = sshll.u32 %s1641_s14, 4  ;;  %s796_s29 = int_to_ptr.hbm [resolvable:$true] %s795_s29 }
   0x6   :  { %168 = vmatpush.msra.mxu0 %v1061_v22  ;;  %v160_v30 = vsel %vm159_vm1, %v1084_v27, 0.0  ;;  %312 = vmatpush.msra.mxu2 %v291_v28  ;;  %v290_v31 = vld [vmem:[%s1631_s4] sm:$0xff]  ;;  %v1107_v35 = vld [vmem:[%s1633_s6 + $0x50] sm:$0xff]  ;;  %v1115_v39 = vld [vmem:[%s1633_s6 + $0x48] sm:$0xff]  ;;  %s793_s26 = sshll.u32 %s953_s25, 4  ;;  %s794_s26 = int_to_ptr.vmem [resolvable:$true] %s793_s26 }
   0x7   :  { %199 = vmatpush.msra.mxu1 %v1061_v22  ;;  %v161_v36 = vrot.slane %v160_v30, 4  ;;  %v1122_v41 = vld [vmem:[%s1633_s6 + $0x40] sm:$0xff]  ;;  %v1129_v45 = vld [vmem:[%s1633_s6 + $0x38] sm:$0xff]  ;;  %v1137_v48 = vld [vmem:[%s1633_s6 + $0x30] sm:$0xff] }
   0x8   :  { %169 = vmatpush.msra.mxu0 %v1070_v24  ;;  %313 = vmatpush.msra.mxu2 %v290_v31  ;;  %v1146_v53 = vld [vmem:[%s1633_s6 + $0x28] sm:$0xff]  ;;  %v1157_v57 = vld [vmem:[%s1633_s6 + $0x20] sm:$0xff]  ;;  %v1165_v62 = vld [vmem:[%s1633_s6 + $0x18] sm:$0xff] }
   0x9   :  { %200 = vmatpush.msra.mxu1 %v1070_v24  ;;  %v162_v42 = vadd.f32 %v161_v36, %v160_v30  ;;  %v1173_v0 = vld [vmem:[%s1633_s6 + $0x10] sm:$0xff]  ;;  %v274_v30 = vld [vmem:[%s1632_s5] sm:$0xff]  ;;  %v275_v31 = vld [vmem:[%s1632_s5 + $0x8] sm:$0xff] }
   0xa   :  { %170 = vmatpush.msra.mxu0 %v1077_v25  ;;  %v279_v36 = vld [vmem:[%s1632_s5 + $0x28] sm:$0xff] }
   0xb   :  { %201 = vmatpush.msra.mxu1 %v1077_v25  ;;  %v163_v49 = vrot.slane %v162_v42, 2 }
   0xc   :  { %56 = vxpose.xlu0.b32.end [2/2] (short) (narrow) %v54_v3, 16  ;;  %171 = vmatpush.msra.mxu0 %v1093_v29 }
   0xd   :  { %202 = vmatpush.msra.mxu1 %v1093_v29  ;;  %v164_v58 = vadd.f32 %v163_v49, %v162_v42  ;;  %v283_v42 = vld [vmem:[%s1632_s5 + $0x48] sm:$0xff]  ;;  %v288_v49 = vld [vmem:[%s1632_s5 + $0x70] sm:$0xff] }
   0xe   :  { %172 = vmatpush.msra.mxu0 %v1107_v35 }
   0xf   :  { %203 = vmatpush.msra.mxu1 %v1107_v35 }
  0x10   :  { %173 = vmatpush.msra.mxu0 %v1115_v39 }
  0x11   :  { %204 = vmatpush.msra.mxu1 %v1115_v39 }
  0x12   :  { %174 = vmatpush.msra.mxu0 %v1122_v41 }
  0x13   :  { %205 = vmatpush.msra.mxu1 %v1122_v41 }
  0x14   :  { %175 = vmatpush.msra.mxu0 %v1129_v45 }
  0x15   :  { %206 = vmatpush.msra.mxu1 %v1129_v45 }
  0x16   :  { %176 = vmatpush.msra.mxu0 %v1137_v48 }
  0x17   :  { %207 = vmatpush.msra.mxu1 %v1137_v48 }
  0x18   :  { %177 = vmatpush.msra.mxu0 %v1146_v53 }
  0x19   :  { %208 = vmatpush.msra.mxu1 %v1146_v53 }
  0x1a   :  { %178 = vmatpush.msra.mxu0 %v1157_v57 }
  0x1b   :  { %209 = vmatpush.msra.mxu1 %v1157_v57 }
  0x1c   :  { %179 = vmatpush.msra.mxu0 %v1165_v62 }
  0x1d   :  { %210 = vmatpush.msra.mxu1 %v1165_v62 }
  0x1e   :  { %180 = vmatpush.msra.mxu0 %v1173_v0 }
  0x1f   :  { %211 = vmatpush.msra.mxu1 %v1173_v0 }
  0xa8   :  { %v71_v4 = vpop.trf.xlu0 }
  0xa9   :  { %v1040_v5 = vadd.f32 %v71_v4, %v53_v1  ;;  %v165_v1 = vrot.slane %v164_v58, 1 }
  0xab   :  { %v90_v6 = vsel %vm89_vm0, %v1040_v5, 0.0 }
  0xac   :  { %91 = vadd.xlane.f32.xlu1 %v90_v6 }
  0xb0   :  { %v72_v7 = vpop.trf.xlu0 }
  0xb1   :  { %v1044_v8 = vadd.f32 %v72_v7, %v54_v3  ;;  %v1181_v3 = vld [vmem:[%s1633_s6 + $0x8] sm:$0xff]  ;;  %v166_v7 = vadd.f32 %v165_v1, %v164_v58 }
  0xb2   :  { %181 = vmatpush.msra.mxu0 %v1181_v3  ;;  %212 = vmatpush.msra.mxu1 %v1181_v3 }
  0xb3   :  { %v93_v9 = vsel %vm89_vm0, %v1044_v8, 0.0 }
  0xb4   :  { %94 = vadd.xlane.f32.xlu1 %v93_v9  ;;  %v96_v10 = vadd.f32 %v93_v9, %v90_v6  ;;  %v1189_v6 = vld [vmem:[%s1633_s6] sm:$0xff]  ;;  %s951_s6 = smov 128  }
  0xb5   :  { %182 = vmatpush.msra.mxu0 %v1189_v6  ;;  %213 = vmatpush.msra.mxu1 %v1189_v6 }
  0xb6   :  { %v97_v11 = vrot.slane %v96_v10, 4  ;;  %183 = vmatmul.f32.vlgmr.msra.gmra.mxu0 %v166_v7 }
  0xb8   :  { %v98_v12 = vadd.f32 %v97_v11, %v96_v10 }
  0xba   :  { %v99_v13 = vrot.slane %v98_v12, 2 }
  0xbc   :  { %v100_v14 = vadd.f32 %v99_v13, %v98_v12 }
  0xbe   :  { %v101_v15 = vrot.slane %v100_v14, 1 }
  0xc0   :  { %v102_v16 = vadd.f32 %v101_v15, %v100_v14 }
  0xc2   :  { %v1048_v17 = vadd.f32 1e-10, %v102_v16 }
  0xc4   :  { %886 = vrsqrt.f32 %v1048_v17  ;;  %vm134_vm6 = vweird.f32 %v1048_v17 }
  0xca   :  { %v1051_v18 = vpop.eup %886 }
  0xcb   :  { %v129_v23 = vmul.f32 %v1051_v18, %v1048_v17  ;;  %vm135_vm3 = vweird.f32 %v1051_v18 }
  0xcc   :  { %vm136_vm7 = vmor %vm134_vm6, %vm135_vm3 }
  0xcd   :  { %v130_v26 = vmul.f32 %v1051_v18, %v129_v23 }
  0xcf   :  { %v131_v38 = vmul.f32 0.5, %v130_v26 }
  0xd1   :  { %v132_v44 = vsub.f32 1.5, %v131_v38  ;;  %v281_v38 = vld [vmem:[%s1632_s5 + $0x38] sm:$0xff] }
  0xd3   :  { %v133_v52 = vmul.f32 %v1051_v18, %v132_v44  ;;  %v285_v44 = vld [vmem:[%s1632_s5 + $0x58] sm:$0xff] }
  0xd5   :  { %v137_v60 = vsel %vm136_vm7, %v1051_v18, %v133_v52 }
 0x11f   :  { %v92_v19 = vpop.xlane.xlu1 %91 }
 0x120   :  { %v103_v20 = vadd.f32 1e-10, %v92_v19 }
 0x122   :  { %888 = vrsqrt.f32 %v103_v20  ;;  %vm111_vm4 = vweird.f32 %v103_v20 }
 0x127   :  { %v95_v32 = vpop.xlane.xlu1 %94 }
 0x128   :  { %v889_v33 = vpop.eup %888  ;;  %v1102_v34 = vadd.f32 1e-10, %v95_v32  ;;  %v276_v32 = vld [vmem:[%s1632_s5 + $0x10] sm:$0xff] }
 0x129   :  { %v106_v37 = vmul.f32 %v889_v33, %v103_v20  ;;  %vm112_vm2 = vweird.f32 %v889_v33 }
 0x12a   :  { %890 = vrsqrt.f32 %v1102_v34  ;;  %vm113_vm5 = vmor %vm111_vm4, %vm112_vm2  ;;  %vm121_vm9 = vweird.f32 %v1102_v34  ;;  %vm786_vm2 = vcmask 50176  }
 0x12b   :  { %v107_v40 = vmul.f32 %v889_v33, %v106_v37  ;;  %v280_v37 = vld [vmem:[%s1632_s5 + $0x30] sm:$0xff] }
 0x12d   :  { %v108_v43 = vmul.f32 0.5, %v107_v40  ;;  %v282_v40 = vld [vmem:[%s1632_s5 + $0x40] sm:$0xff] }
 0x12f   :  { %v109_v46 = vsub.f32 1.5, %v108_v43  ;;  %v284_v43 = vld [vmem:[%s1632_s5 + $0x50] sm:$0xff] }
 0x130   :  { %v891_v47 = vpop.eup %890 }
 0x131   :  { %v116_v50 = vmul.f32 %v891_v47, %v1102_v34  ;;  %v110_v51 = vmul.f32 %v889_v33, %v109_v46  ;;  %vm122_vm8 = vweird.f32 %v891_v47  ;;  %v278_v34 = vld [vmem:[%s1632_s5 + $0x20] sm:$0xff] }
 0x132   :  { %vm123_vm10 = vmor %vm121_vm9, %vm122_vm8  ;;  %v286_v46 = vld [vmem:[%s1632_s5 + $0x60] sm:$0xff] }
 0x133   :  { %v117_v54 = vmul.f32 %v891_v47, %v116_v50  ;;  %v114_v55 = vsel %vm113_vm5, %v889_v33, %v110_v51  ;;  %v277_v33 = vld [vmem:[%s1632_s5 + $0x18] sm:$0xff] }
 0x134   :  { %v125_v56 = vmul.f32 %v114_v55, %v1040_v5  ;;  %v289_v50 = vld [vmem:[%s1632_s5 + $0x78] sm:$0xff] }
 0x135   :  { %v118_v59 = vmul.f32 0.5, %v117_v54 }
 0x136   :  { %v138_v61 = vmul.f32 %v137_v60, %v125_v56 }
 0x137   :  { %v119_v63 = vsub.f32 1.5, %v118_v59 }
 0x138   :  { %242 = vxpose.xlu2.b32.start [1/2] (short) (narrow) %v138_v61, 16  ;;  %140 = vst.msk [vmem:[#allocation4] sm:$0xff] %vm89_vm0, %v138_v61 }
 0x139   :  { %v120_v2 = vmul.f32 %v891_v47, %v119_v63 }
 0x13b   :  { %v124_v4 = vsel %vm123_vm10, %v891_v47, %v120_v2  ;;  %v287_v47 = vld [vmem:[%s1632_s5 + $0x68] sm:$0xff] }
 0x13c   :  { %v126_v5 = vmul.f32 %v124_v4, %v1044_v8  ;;  %v184_v8 = vpop.f32.mrf.mxu0 }
 0x13d   :  { %v187_v10 = vmul.f32 0.03125, %v184_v8 }
 0x13e   :  { %v139_v9 = vmul.f32 %v137_v60, %v126_v5 }
 0x13f   :  { %v188_v11 = vperm.slane %v187_v10, 0 }
 0x140   :  { %141 = vst.msk [vmem:[#allocation4 + $0x8] sm:$0xff] %vm89_vm0, %v139_v9  ;;  %243 = vxpose.xlu2.b32.end [2/2] (short) (narrow) %v139_v9, 16 }
 0x141   :  { %v1197_v12 = vsub.f32 %v1084_v27, %v188_v11 }
 0x143   :  { %v190_v13 = vmul.f32 %v1197_v12, %v1197_v12 }
 0x145   :  { %v191_v14 = vsel %vm159_vm1, %v190_v13, 0.0 }
 0x146   :  { %v192_v15 = vrot.slane %v191_v14, 4 }
 0x148   :  { %v193_v16 = vadd.f32 %v192_v15, %v191_v14 }
 0x14a   :  { %v194_v17 = vrot.slane %v193_v16, 2 }
 0x14c   :  { %v195_v18 = vadd.f32 %v194_v17, %v193_v16 }
 0x14e   :  { %v196_v19 = vrot.slane %v195_v18, 1 }
 0x150   :  { %v197_v23 = vadd.f32 %v196_v19, %v195_v18 }
 0x152   :  { %214 = vmatmul.f32.vlgmr.msra.gmra.mxu1 %v197_v23 }
 0x1cf   :  { %v215_v5 = vpop.f32.mrf.mxu1 }
 0x1d0   :  { %v218_v7 = vmul.f32 0.03125, %v215_v5  ;;  %v861_v5 = vld [vmem:[%s1634_s7 + $0x1a8] sm:$0xff] }
 0x1d1   :  { %v258_v20 = vpop.trf.xlu2 }
 0x1d2   :  { %822 = vmatmul.msk.f32.vlgmr.msra.gmra.mxu2 %vm89_vm0, %v258_v20  ;;  %v219_v9 = vadd.f32 1e-05, %v218_v7  ;;  %v854_v7 = vld [vmem:[%s1634_s7 + $0x170] sm:$0xff] }
 0x1d4   :  { %892 = vrsqrt.f32 %v219_v9  ;;  %vm226_vm11 = vweird.f32 %v219_v9 }
 0x1d9   :  { %v259_v26 = vpop.trf.xlu2 }
 0x1da   :  { %823 = vmatmul.msk.f32.gmra.mxu2 %vm89_vm0, %v259_v26  ;;  %v893_v11 = vpop.eup %892 }
 0x1db   :  { %v221_v13 = vmul.f32 %v893_v11, %v219_v9  ;;  %vm227_vm12 = vweird.f32 %v893_v11  ;;  %v859_v9 = vld [vmem:[%s1634_s7 + $0x198] sm:$0xff] }
 0x1dc   :  { %vm228_vm13 = vmor %vm226_vm11, %vm227_vm12 }
 0x1dd   :  { %v222_v15 = vmul.f32 %v893_v11, %v221_v13  ;;  %v855_v13 = vld [vmem:[%s1634_s7 + $0x178] sm:$0xff] }
 0x1df   :  { %v223_v18 = vmul.f32 0.5, %v222_v15  ;;  %v853_v15 = vld [vmem:[%s1634_s7 + $0x168] sm:$0xff] }
 0x1e1   :  { %v224_v23 = vsub.f32 1.5, %v223_v18 }
 0x255   :  { %v315_v27 = vpop.f32.mrf.mxu2 }
 0x25d   :  { %v318_v28 = vpop.f32.mrf.mxu2 }
 0x25e   :  { %383 = vmatpush.msra.mxu3 %v318_v28 }
 0x260   :  { %384 = vmatpush.msra.mxu3 %v315_v27 }
 0x261   :  { %824 = vmatmul.msk.f32.vlgmr.msra.gmra.mxu3 %vm89_vm0, %v274_v30 }
 0x269   :  { %825 = vmatmul.msk.f32.gmra.mxu3 %vm89_vm0, %v275_v31 }
 0x271   :  { %826 = vmatmul.msk.f32.gmra.mxu3 %vm89_vm0, %v276_v32 }
 0x279   :  { %827 = vmatmul.msk.f32.gmra.mxu3 %vm89_vm0, %v277_v33  ;;  %v498_v33 = vld [vmem:[%s1634_s7 + $0xe0] sm:$0xff] }
 0x281   :  { %828 = vmatmul.msk.f32.gmra.mxu3 %vm89_vm0, %v278_v34  ;;  %v492_v34 = vld [vmem:[%s1634_s7 + $0xb0] sm:$0xff] }
 0x289   :  { %829 = vmatmul.msk.f32.gmra.mxu3 %vm89_vm0, %v279_v36  ;;  %v490_v36 = vld [vmem:[%s1634_s7 + $0xa0] sm:$0xff] }
 0x291   :  { %830 = vmatmul.msk.f32.gmra.mxu3 %vm89_vm0, %v280_v37  ;;  %v488_v37 = vld [vmem:[%s1634_s7 + $0x90] sm:$0xff] }
 0x299   :  { %831 = vmatmul.msk.f32.gmra.mxu3 %vm89_vm0, %v281_v38  ;;  %v486_v38 = vld [vmem:[%s1634_s7 + $0x80] sm:$0xff] }
 0x2a1   :  { %832 = vmatmul.msk.f32.gmra.mxu3 %vm89_vm0, %v282_v40  ;;  %v484_v40 = vld [vmem:[%s1634_s7 + $0x70] sm:$0xff] }
 0x2a9   :  { %833 = vmatmul.msk.f32.gmra.mxu3 %vm89_vm0, %v283_v42  ;;  %v482_v42 = vld [vmem:[%s1634_s7 + $0x60] sm:$0xff] }
 0x2b1   :  { %834 = vmatmul.msk.f32.gmra.mxu3 %vm89_vm0, %v284_v43  ;;  %v480_v43 = vld [vmem:[%s1634_s7 + $0x50] sm:$0xff] }
 0x2b9   :  { %835 = vmatmul.msk.f32.gmra.mxu3 %vm89_vm0, %v285_v44  ;;  %v478_v44 = vld [vmem:[%s1634_s7 + $0x40] sm:$0xff] }
 0x2c1   :  { %836 = vmatmul.msk.f32.gmra.mxu3 %vm89_vm0, %v286_v46  ;;  %v476_v46 = vld [vmem:[%s1634_s7 + $0x30] sm:$0xff] }
 0x2c9   :  { %837 = vmatmul.msk.f32.gmra.mxu3 %vm89_vm0, %v287_v47  ;;  %v474_v47 = vld [vmem:[%s1634_s7 + $0x20] sm:$0xff] }
 0x2d1   :  { %838 = vmatmul.msk.f32.gmra.mxu3 %vm89_vm0, %v288_v49  ;;  %v472_v49 = vld [vmem:[%s1634_s7 + $0x10] sm:$0xff] }
 0x2d9   :  { %839 = vmatmul.msk.f32.gmra.mxu3 %vm89_vm0, %v289_v50  ;;  %v470_v50 = vld [vmem:[%s1634_s7] sm:$0xff]  ;;  %vm762_vm0 = vcmask 64512  }
 0x2e4   :  { %v1268_v51 = vpop.f32.mrf.mxu3 }
 0x2ec   :  { %v1270_v52 = vpop.f32.mrf.mxu3 }
 0x2f4   :  { %v1272_v54 = vpop.f32.mrf.mxu3 }
 0x2fc   :  { %v1274_v55 = vpop.f32.mrf.mxu3 }
 0x304   :  { %v398_v56 = vpop.f32.mrf.mxu3 }
 0x30c   :  { %v401_v58 = vpop.f32.mrf.mxu3 }
 0x30d   :  { %v439_v30 = vmul.f32 %v401_v58, %v1146_v53  ;;  %v436_v53 = vmul.f32 %v1272_v54, %v1173_v0  ;;  %v500_v0 = vld [vmem:[%s1634_s7 + $0xf0] sm:$0xff]  ;;  %v869_v58 = vld [vmem:[%s1634_s7 + $0x1e8] sm:$0xff] }
 0x30e   :  { %v866_v54 = vld [vmem:[%s1634_s7 + $0x1d0] sm:$0xff] }
 0x314   :  { %v404_v59 = vpop.f32.mrf.mxu3 }
 0x315   :  { %v440_v28 = vmul.f32 %v404_v59, %v1137_v48  ;;  %v437_v48 = vmul.f32 %v1274_v55, %v1165_v62  ;;  %v434_v62 = vmul.f32 %v1268_v51, %v1189_v6  ;;  %v494_v6 = vld [vmem:[%s1634_s7 + $0xc0] sm:$0xff]  ;;  %v870_v51 = vld [vmem:[%s1634_s7 + $0x1f0] sm:$0xff] }
 0x316   :  { %557 = vmatpush.msrb.mxu1 %v870_v51  ;;  %v864_v55 = vld [vmem:[%s1634_s7 + $0x1c0] sm:$0xff]  ;;  %v862_v59 = vld [vmem:[%s1634_s7 + $0x1b0] sm:$0xff] }
 0x317   :  { %v663_v51 = vld [vmem:[%s1635_s8 + $0xc0] sm:$0xff] }
 0x31c   :  { %v407_v60 = vpop.f32.mrf.mxu3 }
 0x324   :  { %v410_v61 = vpop.f32.mrf.mxu3 }
 0x32c   :  { %v413_v63 = vpop.f32.mrf.mxu3 }
 0x334   :  { %v416_v1 = vpop.f32.mrf.mxu3 }
 0x33c   :  { %v419_v2 = vpop.f32.mrf.mxu3 }
 0x33d   :  { %v445_v26 = vmul.f32 %v419_v2, %v1093_v29  ;;  %v441_v29 = vmul.f32 %v407_v60, %v1129_v45  ;;  %v881_v45 = vld [vmem:[%s1629_s2] ss:$0 sm:$0xff]  ;;  %v867_v60 = vld [vmem:[%s1634_s7 + $0x1d8] sm:$0xff] }
 0x33e   :  { %v863_v2 = vld [vmem:[%s1634_s7 + $0x1b8] sm:$0xff] }
 0x344   :  { %v422_v4 = vpop.f32.mrf.mxu3 }
 0x345   :  { %v446_v20 = vmul.f32 %v422_v4, %v1077_v25  ;;  %v442_v25 = vmul.f32 %v410_v61, %v1122_v41  ;;  %v860_v61 = vld [vmem:[%s1634_s7 + $0x1a0] sm:$0xff] }
 0x346   :  { %v856_v4 = vld [vmem:[%s1634_s7 + $0x180] sm:$0xff] }
 0x34c   :  { %v425_v8 = vpop.f32.mrf.mxu3 }
 0x34d   :  { %v447_v19 = vmul.f32 %v425_v8, %v1070_v24  ;;  %v443_v24 = vmul.f32 %v413_v63, %v1115_v39  ;;  %v438_v39 = vmul.f32 %v398_v56, %v1157_v57  ;;  %v882_v57 = vld [vmem:[%s1630_s3] ss:$0 sm:$0xff]  ;;  %v871_v56 = vld [vmem:[%s1634_s7 + $0x1f8] sm:$0xff]  ;;  %v865_v63 = vld [vmem:[%s1634_s7 + $0x1c8] sm:$0xff] }
 0x34e   :  { %v852_v8 = vld [vmem:[%s1634_s7 + $0x160] sm:$0xff] }
 0x354   :  { %v428_v10 = vpop.f32.mrf.mxu3 }
 0x355   :  { %v448_v17 = vmul.f32 %v428_v10, %v1061_v22  ;;  %v225_v22 = vmul.f32 %v893_v11, %v224_v23  ;;  %v857_v10 = vld [vmem:[%s1634_s7 + $0x188] sm:$0xff]  ;;  %v842_v23 = vld [vmem:[%s1634_s7 + $0x110] sm:$0xff] }
 0x357   :  { %v229_v27 = vsel %vm228_vm13, %v893_v11, %v225_v22  ;;  %v850_v11 = vld [vmem:[%s1634_s7 + $0x150] sm:$0xff]  ;;  %v501_v22 = vld [vmem:[%s1634_s7 + $0xf8] sm:$0xff] }
 0x35c   :  { %v431_v14 = vpop.f32.mrf.mxu3 }
 0x35d   :  { %v449_v16 = vmul.f32 %v431_v14, %v1056_v21  ;;  %v444_v21 = vmul.f32 %v416_v1, %v1107_v35  ;;  %v230_v35 = vperm.slane %v229_v27, 0  ;;  %v858_v1 = vld [vmem:[%s1634_s7 + $0x190] sm:$0xff]  ;;  %v848_v14 = vld [vmem:[%s1634_s7 + $0x140] sm:$0xff]  ;;  %v495_v27 = vld [vmem:[%s1634_s7 + $0xc8] sm:$0xff] }
 0x35f   :  { %450 = vmatpush.msrb.mxu2 %v449_v16  ;;  %502 = vmatpush.msrb.mxu0 %v449_v16  ;;  %v231_v41 = vmul.f32 %v230_v35, %v1197_v12  ;;  %v435_v12 = vmul.f32 %v1270_v52, %v1181_v3  ;;  %v496_v3 = vld [vmem:[%s1634_s7 + $0xd0] sm:$0xff]  ;;  %v868_v52 = vld [vmem:[%s1634_s7 + $0x1e0] sm:$0xff]  ;;  %v489_v35 = vld [vmem:[%s1634_s7 + $0x98] sm:$0xff] }
 0x360   :  { %558 = vmatpush.msrb.mxu1 %v868_v52  ;;  %v846_v16 = vld [vmem:[%s1634_s7 + $0x130] sm:$0xff]  ;;  %v646_v52 = vld [vmem:[%s1635_s8 + $0x38] sm:$0xff] }
 0x361   :  { %451 = vmatpush.msrb.mxu2 %v448_v17  ;;  %503 = vmatpush.msrb.mxu0 %v448_v17  ;;  %v236_v31 = vmul.f32 %v881_v45, %v231_v41  ;;  %v851_v17 = vld [vmem:[%s1634_s7 + $0x158] sm:$0xff]  ;;  %v845_v41 = vld [vmem:[%s1634_s7 + $0x128] sm:$0xff] }
 0x362   :  { %559 = vmatpush.msrb.mxu1 %v866_v54  ;;  %v483_v45 = vld [vmem:[%s1634_s7 + $0x68] sm:$0xff]  ;;  %v662_v54 = vld [vmem:[%s1635_s8 + $0xb8] sm:$0xff] }
 0x363   :  { %452 = vmatpush.msrb.mxu2 %v447_v19  ;;  %504 = vmatpush.msrb.mxu0 %v447_v19  ;;  %v241_v32 = vadd.f32 %v882_v57, %v236_v31  ;;  %v844_v19 = vld [vmem:[%s1634_s7 + $0x120] sm:$0xff]  ;;  %v841_v31 = vld [vmem:[%s1634_s7 + $0x108] sm:$0xff] }
 0x364   :  { %560 = vmatpush.msrb.mxu1 %v864_v55  ;;  %v479_v57 = vld [vmem:[%s1634_s7 + $0x48] sm:$0xff]  ;;  %v645_v55 = vld [vmem:[%s1635_s8 + $0x30] sm:$0xff] }
 0x365   :  { %453 = vmatpush.msrb.mxu2 %v446_v20  ;;  %505 = vmatpush.msrb.mxu0 %v446_v20  ;;  %v849_v20 = vld [vmem:[%s1634_s7 + $0x148] sm:$0xff] }
 0x366   :  { %561 = vmatpush.msrb.mxu1 %v862_v59 }
 0x367   :  { %454 = vmatpush.msrb.mxu2 %v445_v26  ;;  %506 = vmatpush.msrb.mxu0 %v445_v26  ;;  %v847_v26 = vld [vmem:[%s1634_s7 + $0x138] sm:$0xff] }
 0x368   :  { %562 = vmatpush.msrb.mxu1 %v860_v61 }
 0x369   :  { %455 = vmatpush.msrb.mxu2 %v444_v21  ;;  %507 = vmatpush.msrb.mxu0 %v444_v21  ;;  %v840_v21 = vld [vmem:[%s1634_s7 + $0x100] sm:$0xff] }
 0x36a   :  { %563 = vmatpush.msrb.mxu1 %v858_v1  ;;  %v641_v1 = vld [vmem:[%s1635_s8 + $0x10] sm:$0xff] }
 0x36b   :  { %456 = vmatpush.msrb.mxu2 %v443_v24  ;;  %508 = vmatpush.msrb.mxu0 %v443_v24  ;;  %v499_v24 = vld [vmem:[%s1634_s7 + $0xe8] sm:$0xff] }
 0x36c   :  { %564 = vmatpush.msrb.mxu1 %v856_v4  ;;  %v640_v4 = vld [vmem:[%s1635_s8 + $0x8] sm:$0xff] }
 0x36d   :  { %457 = vmatpush.msrb.mxu2 %v442_v25  ;;  %509 = vmatpush.msrb.mxu0 %v442_v25  ;;  %v497_v25 = vld [vmem:[%s1634_s7 + $0xd8] sm:$0xff] }
 0x36e   :  { %565 = vmatpush.msrb.mxu1 %v854_v7  ;;  %v639_v7 = vld [vmem:[%s1635_s8] sm:$0xff] }
 0x36f   :  { %458 = vmatpush.msrb.mxu2 %v441_v29  ;;  %510 = vmatpush.msrb.mxu0 %v441_v29  ;;  %v493_v29 = vld [vmem:[%s1634_s7 + $0xb8] sm:$0xff] }
 0x370   :  { %566 = vmatpush.msrb.mxu1 %v852_v8  ;;  %v658_v8 = vld [vmem:[%s1635_s8 + $0x98] sm:$0xff] }
 0x371   :  { %459 = vmatpush.msrb.mxu2 %v440_v28  ;;  %511 = vmatpush.msrb.mxu0 %v440_v28  ;;  %v491_v28 = vld [vmem:[%s1634_s7 + $0xa8] sm:$0xff] }
 0x372   :  { %567 = vmatpush.msrb.mxu1 %v850_v11  ;;  %v656_v11 = vld [vmem:[%s1635_s8 + $0x88] sm:$0xff] }
 0x373   :  { %460 = vmatpush.msrb.mxu2 %v439_v30  ;;  %512 = vmatpush.msrb.mxu0 %v439_v30  ;;  %v487_v30 = vld [vmem:[%s1634_s7 + $0x88] sm:$0xff] }
 0x374   :  { %568 = vmatpush.msrb.mxu1 %v848_v14 }
 0x375   :  { %461 = vmatpush.msrb.mxu2 %v438_v39  ;;  %513 = vmatpush.msrb.mxu0 %v438_v39  ;;  %v485_v39 = vld [vmem:[%s1634_s7 + $0x78] sm:$0xff] }
 0x376   :  { %569 = vmatpush.msrb.mxu1 %v846_v16 }
 0x377   :  { %462 = vmatpush.msrb.mxu2 %v437_v48  ;;  %514 = vmatpush.msrb.mxu0 %v437_v48  ;;  %v843_v48 = vld [vmem:[%s1634_s7 + $0x118] sm:$0xff] }
 0x378   :  { %570 = vmatpush.msrb.mxu1 %v844_v19 }
 0x379   :  { %463 = vmatpush.msrb.mxu2 %v436_v53  ;;  %515 = vmatpush.msrb.mxu0 %v436_v53  ;;  %v481_v53 = vld [vmem:[%s1634_s7 + $0x58] sm:$0xff] }
 0x37a   :  { %571 = vmatpush.msrb.mxu1 %v842_v23 }
 0x37b   :  { %464 = vmatpush.msrb.mxu2 %v435_v12  ;;  %516 = vmatpush.msrb.mxu0 %v435_v12  ;;  %v477_v12 = vld [vmem:[%s1634_s7 + $0x38] sm:$0xff] }
 0x37c   :  { %572 = vmatpush.msrb.mxu1 %v840_v21  ;;  %v722_v21 = vld [vmem:[%s1637_s10 + $0x10] sm:$0xff] }
 0x37d   :  { %465 = vmatpush.msrb.mxu2 %v434_v62  ;;  %517 = vmatpush.msrb.mxu0 %v434_v62  ;;  %v475_v62 = vld [vmem:[%s1634_s7 + $0x28] sm:$0xff] }
 0x37e   :  { %466 = vmatmul.f32.vlgmr.msrb.gmra.mxu2 %v241_v32  ;;  %617 = vmatpush.msra.mxu1 %v501_v22  ;;  %v471_v32 = vld [vmem:[%s1634_s7 + $0x8] sm:$0xff] }
 0x37f   :  { %597 = vmatpush.msra.mxu0 %v500_v0  ;;  %577 = vmatpush.msra.mxu2 %v871_v56  ;;  %v473_v0 = vld [vmem:[%s1634_s7 + $0x18] sm:$0xff]  ;;  %v644_v56 = vld [vmem:[%s1635_s8 + $0x28] sm:$0xff] }
 0x380   :  { %618 = vmatpush.msra.mxu1 %v499_v24  ;;  %v721_v22 = vld [vmem:[%s1637_s10 + $0x8] sm:$0xff]  ;;  %v720_v24 = vld [vmem:[%s1637_s10] sm:$0xff] }
 0x381   :  { %598 = vmatpush.msra.mxu0 %v498_v33  ;;  %578 = vmatpush.msra.mxu2 %v869_v58  ;;  %v654_v33 = vld [vmem:[%s1635_s8 + $0x78] sm:$0xff] }
 0x382   :  { %619 = vmatpush.msra.mxu1 %v497_v25  ;;  %v883_v25 = vld [vmem:[%s1636_s9] ss:$0 sm:$0xff]  ;;  %s950_s9 = smov [#allocation4]  }
 0x383   :  { %599 = vmatpush.msra.mxu0 %v496_v3  ;;  %579 = vmatpush.msra.mxu2 %v867_v60  ;;  %v653_v3 = vld [vmem:[%s1635_s8 + $0x70] sm:$0xff]  ;;  %v643_v60 = vld [vmem:[%s1635_s8 + $0x20] sm:$0xff]  ;;  %s803_s22 = sshll.u32 %s950_s9, 4  ;;  %s804_s22 = int_to_ptr.vmem [resolvable:$true] %s803_s22 }
 0x384   :  { %620 = vmatpush.msra.mxu1 %v495_v27 }
 0x385   :  { %600 = vmatpush.msra.mxu0 %v494_v6  ;;  %580 = vmatpush.msra.mxu2 %v865_v63  ;;  %v670_v6 = vld [vmem:[%s1635_s8 + $0xf8] sm:$0xff] }
 0x386   :  { %621 = vmatpush.msra.mxu1 %v493_v29  ;;  %v642_v63 = vld [vmem:[%s1635_s8 + $0x18] sm:$0xff] }
 0x387   :  { %601 = vmatpush.msra.mxu0 %v492_v34  ;;  %581 = vmatpush.msra.mxu2 %v863_v2  ;;  %v652_v34 = vld [vmem:[%s1635_s8 + $0x68] sm:$0xff]  ;;  %v661_v2 = vld [vmem:[%s1635_s8 + $0xb0] sm:$0xff] }
 0x388   :  { %622 = vmatpush.msra.mxu1 %v491_v28 }
 0x389   :  { %602 = vmatpush.msra.mxu0 %v490_v36  ;;  %582 = vmatpush.msra.mxu2 %v861_v5  ;;  %v669_v36 = vld [vmem:[%s1635_s8 + $0xf0] sm:$0xff]  ;;  %v660_v5 = vld [vmem:[%s1635_s8 + $0xa8] sm:$0xff] }
 0x38a   :  { %623 = vmatpush.msra.mxu1 %v489_v35 }
 0x38b   :  { %603 = vmatpush.msra.mxu0 %v488_v37  ;;  %583 = vmatpush.msra.mxu2 %v859_v9  ;;  %v668_v37 = vld [vmem:[%s1635_s8 + $0xe8] sm:$0xff]  ;;  %v659_v9 = vld [vmem:[%s1635_s8 + $0xa0] sm:$0xff] }
 0x38c   :  { %624 = vmatpush.msra.mxu1 %v487_v30 }
 0x38d   :  { %604 = vmatpush.msra.mxu0 %v486_v38  ;;  %584 = vmatpush.msra.mxu2 %v857_v10  ;;  %v651_v38 = vld [vmem:[%s1635_s8 + $0x60] sm:$0xff]  ;;  %v657_v10 = vld [vmem:[%s1635_s8 + $0x90] sm:$0xff] }
 0x38e   :  { %625 = vmatpush.msra.mxu1 %v485_v39 }
 0x38f   :  { %605 = vmatpush.msra.mxu0 %v484_v40  ;;  %585 = vmatpush.msra.mxu2 %v855_v13  ;;  %v667_v40 = vld [vmem:[%s1635_s8 + $0xe0] sm:$0xff] }
 0x390   :  { %626 = vmatpush.msra.mxu1 %v483_v45  ;;  %v655_v13 = vld [vmem:[%s1635_s8 + $0x80] sm:$0xff] }
 0x391   :  { %606 = vmatpush.msra.mxu0 %v482_v42  ;;  %586 = vmatpush.msra.mxu2 %v853_v15  ;;  %v650_v42 = vld [vmem:[%s1635_s8 + $0x58] sm:$0xff] }
 0x392   :  { %627 = vmatpush.msra.mxu1 %v481_v53  ;;  %v884_v53 = vld [vmem:[%s1638_s11] ss:$0 sm:$0xff]  ;;  %s952_s11 = smov 8  }
 0x393   :  { %607 = vmatpush.msra.mxu0 %v480_v43  ;;  %587 = vmatpush.msra.mxu2 %v851_v17  ;;  %v666_v43 = vld [vmem:[%s1635_s8 + $0xd8] sm:$0xff] }
 0x394   :  { %628 = vmatpush.msra.mxu1 %v479_v57 }
 0x395   :  { %608 = vmatpush.msra.mxu0 %v478_v44  ;;  %588 = vmatpush.msra.mxu2 %v849_v20  ;;  %v649_v44 = vld [vmem:[%s1635_s8 + $0x50] sm:$0xff] }
 0x396   :  { %629 = vmatpush.msra.mxu1 %v477_v12 }
 0x397   :  { %609 = vmatpush.msra.mxu0 %v476_v46  ;;  %589 = vmatpush.msra.mxu2 %v847_v26  ;;  %v665_v46 = vld [vmem:[%s1635_s8 + $0xd0] sm:$0xff]  ;;  %v723_v26 = vld [vmem:[%s1637_s10 + $0x18] sm:$0xff] }
 0x398   :  { %630 = vmatpush.msra.mxu1 %v475_v62 }
 0x399   :  { %610 = vmatpush.msra.mxu0 %v474_v47  ;;  %590 = vmatpush.msra.mxu2 %v845_v41  ;;  %v648_v47 = vld [vmem:[%s1635_s8 + $0x48] sm:$0xff] }
 0x39a   :  { %631 = vmatpush.msra.mxu1 %v473_v0 }
 0x39b   :  { %611 = vmatpush.msra.mxu0 %v472_v49  ;;  %591 = vmatpush.msra.mxu2 %v843_v48  ;;  %v664_v49 = vld [vmem:[%s1635_s8 + $0xc8] sm:$0xff]  ;;  %v757_v48 = vld [vmem:[%s1639_s12] sm:$0xff]  ;;  %s805_s12 = sshll.u32 %s1642_s15, 4  ;;  %s806_s12 = int_to_ptr.hbm [resolvable:$true] %s805_s12 }
 0x39c   :  { %632 = vmatpush.msra.mxu1 %v471_v32  ;;  %811 = dma.vmem_to_hbm [thread:$0]  %s804_s22, 256, %s806_s12, [#allocation5], %s951_s6, %s951_s6, %s952_s11  }
 0x39d   :  { %612 = vmatpush.msra.mxu0 %v470_v50  ;;  %592 = vmatpush.msra.mxu2 %v841_v31  ;;  %v647_v50 = vld [vmem:[%s1635_s8 + $0x40] sm:$0xff] }
 0x39f   :  { %675 = vmatpush.msrb.mxu2 %v654_v33  ;;  %v885_v33 = vld [vmem:[%s1640_s13] ss:$0 sm:$0xff] }
 0x3a1   :  { %676 = vmatpush.msrb.mxu2 %v653_v3 }
 0x3a3   :  { %677 = vmatpush.msrb.mxu2 %v652_v34 }
 0x3a5   :  { %678 = vmatpush.msrb.mxu2 %v651_v38 }
 0x3a7   :  { %679 = vmatpush.msrb.mxu2 %v650_v42 }
 0x3a9   :  { %680 = vmatpush.msrb.mxu2 %v649_v44 }
 0x3ab   :  { %681 = vmatpush.msrb.mxu2 %v648_v47 }
 0x3ad   :  { %682 = vmatpush.msrb.mxu2 %v647_v50 }
 0x3af   :  { %683 = vmatpush.msrb.mxu2 %v646_v52 }
 0x3b1   :  { %684 = vmatpush.msrb.mxu2 %v645_v55 }
 0x3b3   :  { %685 = vmatpush.msrb.mxu2 %v644_v56 }
 0x3b5   :  { %686 = vmatpush.msrb.mxu2 %v643_v60 }
 0x3b7   :  { %687 = vmatpush.msrb.mxu2 %v642_v63 }
 0x3b9   :  { %688 = vmatpush.msrb.mxu2 %v641_v1 }
 0x3bb   :  { %689 = vmatpush.msrb.mxu2 %v640_v4 }
 0x3bd   :  { %690 = vmatpush.msrb.mxu2 %v639_v7 }
 0x401   :  { %v1423_v18 = vpop.f32.mrf.mxu2 }
 0x402   :  { %518 = vmatmul.f32.vlgmr.msrb.gmra.mxu0 %v1423_v18 }
 0x403   :  { %695 = vmatpush.msrb.mxu0 %v670_v6 }
 0x405   :  { %696 = vmatpush.msrb.mxu0 %v669_v36 }
 0x407   :  { %697 = vmatpush.msrb.mxu0 %v668_v37 }
 0x409   :  { %698 = vmatpush.msrb.mxu0 %v667_v40 }
 0x40a   :  { %613 = vmatmul.f32.vlgmr.msra.gmra.mxu0 %v1423_v18 }
 0x40b   :  { %699 = vmatpush.msrb.mxu0 %v666_v43 }
 0x40d   :  { %700 = vmatpush.msrb.mxu0 %v665_v46 }
 0x40f   :  { %701 = vmatpush.msrb.mxu0 %v664_v49 }
 0x411   :  { %702 = vmatpush.msrb.mxu0 %v663_v51 }
 0x413   :  { %703 = vmatpush.msrb.mxu0 %v662_v54 }
 0x415   :  { %704 = vmatpush.msrb.mxu0 %v661_v2 }
 0x417   :  { %705 = vmatpush.msrb.mxu0 %v660_v5 }
 0x419   :  { %706 = vmatpush.msrb.mxu0 %v659_v9 }
 0x41b   :  { %707 = vmatpush.msrb.mxu0 %v658_v8 }
 0x41d   :  { %708 = vmatpush.msrb.mxu0 %v657_v10 }
 0x41f   :  { %709 = vmatpush.msrb.mxu0 %v656_v11 }
 0x421   :  { %710 = vmatpush.msrb.mxu0 %v655_v13 }
 0x47f   :  { %v519_v58 = vpop.f32.mrf.mxu0 }
 0x480   :  { %v522_v59 = vmul.f32 2.0, %v519_v58 }
 0x482   :  { %v523_v61 = vsub.f32 %v522_v59, %v1423_v18 }
 0x484   :  { %573 = vmatmul.f32.vlgmr.msrb.gmra.mxu1 %v523_v61  ;;  %593 = vmatmul.f32.vlgmr.msra.gmra.mxu2 %v523_v61 }
 0x485   :  { %744 = vmatpush.msrb.mxu1 %v723_v26  ;;  %781 = vmatpush.msra.mxu2 %v757_v48 }
 0x487   :  { %v614_v14 = vpop.f32.mrf.mxu0  ;;  %745 = vmatpush.msrb.mxu1 %v722_v21 }
 0x489   :  { %746 = vmatpush.msrb.mxu1 %v721_v22 }
 0x48b   :  { %747 = vmatpush.msrb.mxu1 %v720_v24 }
 0x48c   :  { %633 = vmatmul.f32.vlgmr.msra.gmra.mxu1 %v1423_v18 }
 0x501   :  { %v574_v15 = vpop.f32.mrf.mxu1 }
 0x502   :  { %v615_v16 = vadd.f32 %v614_v14, %v574_v15 }
 0x504   :  { %v637_v17 = vmax.f32 %v615_v16, 0.0 }
 0x506   :  { %691 = vmatmul.f32.vlgmr.msrb.gmra.mxu2 %v637_v17 }
 0x507   :  { %v594_v18 = vpop.f32.mrf.mxu2 }
 0x509   :  { %v634_v19 = vpop.f32.mrf.mxu1 }
 0x50a   :  { %v635_v20 = vadd.f32 %v634_v19, %v594_v18 }
 0x50c   :  { %v638_v23 = vmax.f32 %v635_v20, 0.0 }
 0x50e   :  { %711 = vmatmul.f32.vlgmr.msrb.gmra.mxu0 %v638_v23 }
 0x589   :  { %v692_v27 = vpop.f32.mrf.mxu2 }
 0x58a   :  { %v693_v29 = vadd.f32 %v883_v25, %v692_v27 }
 0x58b   :  { %v712_v28 = vpop.f32.mrf.mxu0 }
 0x58c   :  { %v713_v35 = vadd.f32 %v712_v28, %v693_v29 }
 0x58e   :  { %v716_v30 = vmul.f32 1.442695, %v713_v35  ;;  %vm715_vm15 = vcmp.gt.f32.partialorder %v713_v35, 0.0 }
 0x590   :  { %894 = vpow2.f32 %v716_v30 }
 0x596   :  { %v895_v39 = vpop.eup %894 }
 0x597   :  { %v872_v41 = vadd.f32 -1.0, %v895_v39 }
 0x599   :  { %v719_v45 = vsel %vm715_vm15, %v713_v35, %v872_v41 }
 0x59a   :  { %873 = vmatmul.msk.f32.vlgmr.msrb.gmra.mxu1 %vm728_vm14, %v719_v45 }
 0x617   :  { %v749_v31 = vpop.f32.mrf.mxu1 }
 0x618   :  { %v750_v57 = vadd.f32 %v884_v53, %v749_v31 }
 0x61a   :  { %v753_v12 = vmul.f32 1.442695, %v750_v57  ;;  %vm752_vm1 = vcmp.gt.f32.partialorder %v750_v57, 0.0 }
 0x61c   :  { %896 = vpow2.f32 %v753_v12 }
 0x622   :  { %v897_v62 = vpop.eup %896 }
 0x623   :  { %v874_v0 = vadd.f32 -1.0, %v897_v62 }
 0x625   :  { %v756_v32 = vsel %vm752_vm1, %v750_v57, %v874_v0 }
 0x626   :  { %875 = vmatmul.msk.f32.vlgmr.msra.gmra.mxu2 %vm762_vm0, %v756_v32 }
 0x6a9   :  { %v783_v3 = vpop.f32.mrf.mxu2 }
 0x6aa   :  { %v784_v6 = vadd.f32 %v885_v33, %v783_v3 }
 0x6ac   :  { %787 = vst.msk [vmem:[#allocation2] sm:$0x3] %vm786_vm2, %v784_v6 }
 0x6ad   :  { %798 = dma.vmem_to_hbm [thread:$0]  %s794_s26, 32, %s796_s29, [#allocation3]  }
 0x6ae   :  { %946 = dma.done.wait [#allocation3], 32  }
 0x6af   :  { %947 = vsyncadd [#allocation3], 4294967264 }
 0x6b0   :  { %948 = dma.done.wait [#allocation5], 256  }
 0x6b1   :  { %949 = vsyncadd [#allocation5], 4294967040 }
 0x6b2   :  { %820 = vsyncpa [#allocation3], 1 }
 0x6b3   :  { %821 = vsyncpa [#allocation5], 1 }

</bundles_post_ra>
